<compile_context>
chip_gen: v6e
topology: v6e:2x2x1
jax: 0.10.0
libtpu: 0.0.40
codegen_flags: <defaults>
</compile_context>

<pallas_src>
import jax
import jax.numpy as jnp
from jax.experimental import pallas as pl
from jax.experimental.pallas import tpu as pltpu


def _round_up(x, m):
    return ((x + m - 1) // m) * m


# ----------------------------------------------------------------------------- budgets


def _vmem_budget_bytes():
    """Generation-aware scoped-VMEM budget (v7x: ~54 MiB, v5e/v6e: ~108 MiB)."""
    cap = None
    try:
        cap = getattr(pltpu.get_tpu_info(), "vmem_capacity_bytes", None)
    except Exception:
        cap = None
    if not cap:
        cap = 64 * 1024 * 1024            # assume the smallest per-TC VMEM (v7x)
    cap = int(cap)
    return min(cap - (8 << 20), int(cap * 0.85))


def _choose_transform_tile(npad, fpad, kpad, budget):
    """Row tile for pass 1 (X @ W1): account for the (tm, Fpad) stream + resident W1."""
    fitting = []
    for tm in (1024, 512, 256, 128):
        if npad % tm:
            continue
        foot = (2 * tm * fpad * 2          # double-buffered X tile (bf16)
                + 2 * fpad * kpad * 2      # resident W1 (Pallas still allocates 2 bufs)
                + 2 * tm * kpad * 2        # double-buffered output tile (bf16)
                + 2 * tm * kpad * 4)       # in-kernel f32 accumulate temporaries
        if foot <= budget:
            fitting.append(((npad // tm) >= 2, tm))
    if not fitting:
        # TODO(synk): K-tile pass 1 over Fpad for extremely wide feature inputs.
        return 128
    fitting.sort(reverse=True)             # prefer >=2 row tiles (v7x megacore), then big tm
    return fitting[0][1]


def _choose_agg_tiles(npad, kpad, cpad, budget):
    """(tm, tk) for the K-tiled aggregation passes; per-step footprint is O(tm*tk)."""
    kdim = max(kpad, cpad)
    fitting = []
    for tm in (1024, 512, 256, 128):
        if npad % tm:
            continue
        for tk in (1024, 512, 256, 128):
            if npad % tk:
                continue
            foot = (2 * tm * tk * 2                     # double-buffered A tile (bf16)
                    + 2 * tk * kdim * 2                 # double-buffered streamed Z tile
                    + 2 * tm * cpad * 4                 # double-buffered out tile (f32 worst)
                    + tm * kdim * 4                     # f32 accumulator scratch
                    + 2 * (kdim * kdim * 2 + 2 * kdim * 4)   # resident W2 / biases
                    + 3 * tm * kdim * 4)                # in-kernel f32 temporaries headroom
            if foot <= budget:
                fitting.append(((npad // tm) >= 2, tm * tk, tm, tk))
    if not fitting:
        return 128, 128                    # minimal tiles; npad is a multiple of 128
    fitting.sort(reverse=True)             # prefer >=2 row tiles, then largest tiles, then tm
    _, _, tm, tk = fitting[0]
    return tm, tk


# ----------------------------------------------------------------------------- kernels


def _transform_kernel(x_ref, w_ref, o_ref):
    """Row-local feature transform: Z1 = X @ W1 (bf16 operands, f32 accumulate)."""
    o_ref[...] = jnp.dot(
        x_ref[...], w_ref[...], preferred_element_type=jnp.float32
    ).astype(o_ref.dtype)


def _agg_transform_kernel(a_ref, z_ref, b_ref, w_next_ref, o_ref, acc_ref):
    """K-tiled conv1 aggregation + fused next-layer transform:
       acc += A(i,k) @ Z1(k);  at k==last: Z2(i) = relu(acc + b1) @ W2
    """
    k = pl.program_id(1)

    @pl.when(k == 0)
    def _():
        acc_ref[...] = jnp.zeros_like(acc_ref)

    acc_ref[...] += jnp.dot(
        a_ref[...], z_ref[...], preferred_element_type=jnp.float32
    )

    @pl.when(k == pl.num_programs(1) - 1)
    def _():
        h = jnp.maximum(acc_ref[...] + b_ref[...], 0.0)      # f32 bias + ReLU
        # TODO(synk): F.dropout(training=True) not implemented — identity (eval mode).
        o_ref[...] = jnp.dot(
            h.astype(w_next_ref.dtype), w_next_ref[...],
            preferred_element_type=jnp.float32,
        ).astype(o_ref.dtype)


def _agg_logsoftmax_kernel(a_ref, z_ref, b_ref, o_ref, acc_ref):
    """K-tiled conv2 aggregation + log_softmax over the class (lane) dim.

    Padded class columns carry a -1e30 bias, so they contribute exp(~-inf)=0 to the
    normalizer and are discarded by the wrapper slice.
    """
    k = pl.program_id(1)

    @pl.when(k == 0)
    def _():
        acc_ref[...] = jnp.zeros_like(acc_ref)

    acc_ref[...] += jnp.dot(
        a_ref[...], z_ref[...], preferred_element_type=jnp.float32
    )

    @pl.when(k == pl.num_programs(1) - 1)
    def _():
        z = acc_ref[...] + b_ref[...]
        m = jnp.max(z, axis=1, keepdims=True)
        s = z - m
        lse = jnp.log(jnp.sum(jnp.exp(s), axis=1, keepdims=True))
        o_ref[...] = s - lse


# ----------------------------------------------------------------------------- wrapper


def basenet_forward(a_norm_p, x, w1, b1, w2, b2):
    """a_norm_p: GCN-normalized adjacency already padded to (Npad, Npad), Npad % 128 == 0,
    in the matmul streaming dtype (bf16).  Returns log_softmax logits of shape [N, C]."""
    n, f = x.shape
    hid = w1.shape[1]
    c = w2.shape[1]

    npad = a_norm_p.shape[0]
    assert a_norm_p.shape == (npad, npad) and npad % 128 == 0 and npad >= n

    fpad = _round_up(f, 128)
    kpad = _round_up(hid, 128)
    cpad = _round_up(c, 128)

    # Small operands: pad with jnp.pad (zeros are mathematically inert), stream in bf16;
    # biases stay f32, padded class biases get -1e30 so log_softmax ignores those lanes.
    x_p = jnp.pad(x.astype(jnp.bfloat16), ((0, npad - n), (0, fpad - f)))
    w1_p = jnp.pad(w1.astype(jnp.bfloat16), ((0, fpad - f), (0, kpad - hid)))
    b1_p = jnp.pad(b1.reshape(1, -1).astype(jnp.float32), ((0, 0), (0, kpad - hid)))
    w2_p = jnp.pad(w2.astype(jnp.bfloat16), ((0, kpad - hid), (0, cpad - c)))
    b2_p = jnp.pad(b2.reshape(1, -1).astype(jnp.float32), ((0, 0), (0, cpad - c)),
                   constant_values=-1e30)

    budget = _vmem_budget_bytes()
    tile_budget = budget - (4 << 20)                 # extra headroom for Mosaic scratch

    tm1 = _choose_transform_tile(npad, fpad, kpad, tile_budget)
    tm, tk = _choose_agg_tiles(npad, kpad, cpad, tile_budget)

    cparams_rows = pltpu.CompilerParams(
        dimension_semantics=("parallel",),
        vmem_limit_bytes=budget,
    )
    cparams_agg = pltpu.CompilerParams(
        dimension_semantics=("parallel", "arbitrary"),   # rows // 2 TCs; K axis reduces
        vmem_limit_bytes=budget,
    )

    # Pass 1: Z1 = X @ W1  (computed exactly once, row-tiled).
    z1 = pl.pallas_call(
        _transform_kernel,
        out_shape=jax.ShapeDtypeStruct((npad, kpad), jnp.bfloat16),
        grid=(npad // tm1,),
        in_specs=[pl.BlockSpec((tm1, fpad), lambda i: (i, 0)),
                  pl.BlockSpec((fpad, kpad), lambda i: (0, 0))],
        out_specs=pl.BlockSpec((tm1, kpad), lambda i: (i, 0)),
        compiler_params=cparams_rows,
    )(x_p, w1_p)

    # Pass 2: Z2 = relu(A @ Z1 + b1) @ W2   (K-tiled aggregation + fused transform).
    z2 = pl.pallas_call(
        _agg_transform_kernel,
        out_shape=jax.ShapeDtypeStruct((npad, cpad), jnp.bfloat16),
        grid=(npad // tm, npad // tk),
        in_specs=[pl.BlockSpec((tm, tk), lambda i, k: (i, k)),     # A tile (streamed)
                  pl.BlockSpec((tk, kpad), lambda i, k: (k, 0)),   # Z1 tile (streamed)
                  pl.BlockSpec((1, kpad), lambda i, k: (0, 0)),    # b1 (resident, tiny)
                  pl.BlockSpec((kpad, cpad), lambda i, k: (0, 0))],# W2 (resident, tiny)
        out_specs=pl.BlockSpec((tm, cpad), lambda i, k: (i, 0)),
        scratch_shapes=[pltpu.VMEM((tm, kpad), jnp.float32)],
        compiler_params=cparams_agg,
    )(a_norm_p, z1, b1_p, w2_p)

    # Pass 3: out = log_softmax(A @ Z2 + b2, dim=1)   (K-tiled aggregation + finalize).
    out_p = pl.pallas_call(
        _agg_logsoftmax_kernel,
        out_shape=jax.ShapeDtypeStruct((npad, cpad), jnp.float32),
        grid=(npad // tm, npad // tk),
        in_specs=[pl.BlockSpec((tm, tk), lambda i, k: (i, k)),
                  pl.BlockSpec((tk, cpad), lambda i, k: (k, 0)),
                  pl.BlockSpec((1, cpad), lambda i, k: (0, 0))],
        out_specs=pl.BlockSpec((tm, cpad), lambda i, k: (i, 0)),
        scratch_shapes=[pltpu.VMEM((tm, cpad), jnp.float32)],
        compiler_params=cparams_agg,
    )(a_norm_p, z2, b2_p)

    return out_p[:n, :c]


# ----------------------------------------------------------------------------- glue


def build_normalized_adjacency(edge_index, num_nodes, num_nodes_padded=None,
                               dtype=jnp.float32):
    """Dense GCN-normalized adjacency D^{-1/2}(A+I)D^{-1/2}, built directly at padded
    size and cast once to the streaming dtype (no second O(N^2) pad/cast copy).

    A[dst, src] accumulates duplicate edges; self-loops are added only where missing
    (matches torch_geometric's add_remaining_self_loops behaviour).  Padded rows/cols
    stay exactly zero."""
    npad = num_nodes if num_nodes_padded is None else num_nodes_padded
    src, dst = edge_index[0], edge_index[1]
    a = jnp.zeros((npad, npad), jnp.float32)
    a = a.at[dst, src].add(1.0)
    idx = jnp.arange(num_nodes)
    diag = jnp.diagonal(a)[:num_nodes]
    a = a.at[idx, idx].add(jnp.where(diag == 0.0, 1.0, 0.0))
    deg = jnp.sum(a, axis=1)
    d_inv_sqrt = jnp.where(deg > 0.0, 1.0 / jnp.sqrt(jnp.maximum(deg, 1e-12)), 0.0)
    a = a * d_inv_sqrt[:, None] * d_inv_sqrt[None, :]
    return a.astype(dtype)


def glorot(key, shape):
    fan_in, fan_out = shape
    limit = jnp.sqrt(6.0 / (fan_in + fan_out))
    return jax.random.uniform(key, shape, jnp.float32, -limit, limit)


def _reference_forward(a_norm, x, w1, b1, w2, b2):
    """Pure-JAX f32 reference for correctness checking."""
    h = jnp.maximum(a_norm @ (x @ w1) + b1.reshape(1, -1), 0.0)
    z = a_norm @ (h @ w2) + b2.reshape(1, -1)
    return jax.nn.log_softmax(z, axis=1)


if __name__ == "__main__":
    # Small, forward-consistent shapes (hidden chosen MXU-friendly = 128).
    num_nodes = 8
    num_features = 16
    hidden_channels = 128
    num_classes = 4

    key = jax.random.PRNGKey(0)
    k_x, k_w1, k_b1, k_w2, k_b2 = jax.random.split(key, 5)

    x = jax.random.normal(k_x, (num_nodes, num_features), jnp.float32)

    # Deterministic ring graph, both directions; edge_index shape [2, E].
    fwd = jnp.stack([jnp.arange(num_nodes), (jnp.arange(num_nodes) + 1) % num_nodes])
    edge_index = jnp.concatenate([fwd, fwd[::-1]], axis=1)

    npad = _round_up(num_nodes, 128)
    a_p = build_normalized_adjacency(edge_index, num_nodes,
                                     num_nodes_padded=npad, dtype=jnp.bfloat16)

    w1 = glorot(k_w1, (num_features, hidden_channels))
    b1 = 0.1 * jax.random.normal(k_b1, (hidden_channels,), jnp.float32)
    w2 = glorot(k_w2, (hidden_channels, num_classes))
    b2 = 0.1 * jax.random.normal(k_b2, (num_classes,), jnp.float32)

    out = basenet_forward(a_p, x, w1, b1, w2, b2)
    jax.block_until_ready(out)

    assert out.shape == (num_nodes, num_classes)

    # log_softmax rows must sum to ~1 in prob space (computed in f32 in-kernel).
    row_sums = jnp.sum(jnp.exp(out), axis=1)
    assert bool(jnp.all(jnp.abs(row_sums - 1.0) < 1e-4))

    # Match the pure-f32 reference within bf16-matmul drift.
    a_f32 = build_normalized_adjacency(edge_index, num_nodes, dtype=jnp.float32)
    ref = _reference_forward(a_f32, x, w1, b1, w2, b2)
    assert bool(jnp.allclose(out, ref, atol=5e-2, rtol=5e-2))

    print("KERNEL_OK")
</pallas_src>

<mosaic_0001>
module attributes {stable_mosaic.version = 11 : i64} {
  func.func @_transform_kernel(%arg0: i32, %arg1: memref<128x128xbf16, #tpu.memory_space<vmem>>, %arg2: memref<128x128xbf16, #tpu.memory_space<vmem>>, %arg3: memref<128x128xbf16, #tpu.memory_space<vmem>>) attributes {dimension_semantics = [#tpu.dimension_semantics<parallel>], iteration_bounds = array<i64: 1>, scalar_prefetch = 0 : i64, scratch_operands = 0 : i64, tpu.core_type = #tpu.core_type<tc>, window_params = [{transform_indices = @transform_0, window_bounds = array<i64: 128, 128>}, {pipeline_mode = #tpu.pipeline_mode<synchronous>, transform_indices = @transform_1, window_bounds = array<i64: 128, 128>}, {transform_indices = @transform_2, window_bounds = array<i64: 128, 128>}]} {
    %c0 = arith.constant 0 : index
    %c0_0 = arith.constant 0 : index
    %0 = vector.load %arg1[%c0, %c0_0] : memref<128x128xbf16, #tpu.memory_space<vmem>>, vector<128x128xbf16>
    %c0_1 = arith.constant 0 : index
    %c0_2 = arith.constant 0 : index
    %1 = vector.load %arg2[%c0_1, %c0_2] : memref<128x128xbf16, #tpu.memory_space<vmem>>, vector<128x128xbf16>
    %cst = arith.constant dense<0.000000e+00> : vector<128x128xf32>
    %2 = tpu.matmul %0, %1, %cst {dimension_numbers = #tpu.dot_dimension_numbers<[1], [0], [0], [1], [0, 0, 1, 1], [], []>} : vector<128x128xbf16>, vector<128x128xbf16>, vector<128x128xf32> -> vector<128x128xf32>
    %3 = arith.truncf %2 : vector<128x128xf32> to vector<128x128xbf16>
    %c0_3 = arith.constant 0 : index
    %c0_4 = arith.constant 0 : index
    %4 = vector.load %arg3[%c0_3, %c0_4] : memref<128x128xbf16, #tpu.memory_space<vmem>>, vector<128x128xbf16>
    tpu.vector_store %arg3[%c0_3, %c0_4], %3 {strides = array<i32>} : memref<128x128xbf16, #tpu.memory_space<vmem>>, vector<128x128xbf16>,
    return
  }
  func.func @transform_0(%arg0: i32) -> (i32, i32) {
    %c0_i32 = arith.constant 0 : i32
    %c0_i32_0 = arith.constant 0 : i32
    return %arg0, %c0_i32 : i32, i32
  }
  func.func @transform_1(%arg0: i32) -> (i32, i32) {
    %c0_i32 = arith.constant 0 : i32
    %c0_i32_0 = arith.constant 0 : i32
    %c0_i32_1 = arith.constant 0 : i32
    return %c0_i32, %c0_i32_0 : i32, i32
  }
  func.func @transform_2(%arg0: i32) -> (i32, i32) {
    %c0_i32 = arith.constant 0 : i32
    %c0_i32_0 = arith.constant 0 : i32
    return %arg0, %c0_i32 : i32, i32
  }
}

</mosaic_0001>

<bundles_post_ra>
// kernel: tpu_custom_call.1
= control target key start
LH: loop header
LB: loop body
LE: loop exit
PB: predicated region body
PF: predicated region fallthrough
CT: control target
= control target key end

     0   :  { %7 = vsyncpa [#allocation3], 0  ;;  %s648_s0 = inlined_call_operand.hbm [shape: bf16[128,128], index: 0, kind: input, shape index: {}]   ;;  %s649_s1 = inlined_call_operand.hbm [shape: bf16[128,128], index: 1, kind: input, shape index: {}]   ;;  %s650_s2 = inlined_call_operand.hbm [shape: bf16[128,128], index: 2, kind: output, shape index: {}]  }
   0x1   :  { %8 = vsyncpa [#allocation6], 0 }
   0x2   :  { %9 = vsyncpa [#allocation4], 0  ;;  %s610_s9 = smov [#allocation2]  }
   0x3   :  { %s15_s10 = sshll.u32 %s610_s9, 4  ;;  %s16_s10 = int_to_ptr.vmem [resolvable:$true] %s15_s10 }
   0x4   :  { %s552_s11 = scalar_lea.vmem %s16_s10, 1024  ;;  %p557_p1 = scmp.lt.s32.totalorder %s16_s10, %s16_s10 }
   0x5   :  { %p553_p0 = scmp.ne.s32.totalorder %s16_s10, %s552_s11  ;;  %p558_p2 = scmp.lt.s32.totalorder %s552_s11, %s552_s11 }
   0x7   :  { %p559_p3 = por %p558_p2, %p557_p1 }
   0x9   :  { %p560_p4 = pnand %p559_p3, %p553_p0 }
   0xb   :  { %563 = shalt.err (!%p560_p4)
}
   0xc   :  { %s611_s12 = smov 64   ;;  %s612_s13 = smov 4  }
   0xd   :  { %21 = dma.hbm_to_vmem [thread:$0]  %s648_s0, 1024, %s16_s10, [#allocation3], %s611_s12, %s611_s12, %s612_s13  }
   0xe   :  { %s613_s16 = smov [#allocation5]  }
   0xf   :  { %s27_s17 = sshll.u32 %s613_s16, 4  ;;  %s28_s17 = int_to_ptr.vmem [resolvable:$true] %s27_s17 }
  0x10   :  { %s572_s18 = scalar_lea.vmem %s28_s17, 1024  ;;  %p577_p6 = scmp.lt.s32.totalorder %s28_s17, %s28_s17 }
  0x11   :  { %p573_p5 = scmp.ne.s32.totalorder %s28_s17, %s572_s18  ;;  %p578_p7 = scmp.lt.s32.totalorder %s572_s18, %s572_s18 }
  0x13   :  { %p579_p8 = por %p578_p7, %p577_p6 }
  0x15   :  { %p580_p9 = pnand %p579_p8, %p573_p5 }
  0x17   :  { %583 = shalt.err (!%p580_p9)
}
  0x18   :  { %33 = dma.hbm_to_vmem [thread:$0]  %s649_s1, 1024, %s28_s17, [#allocation6], %s611_s12, %s611_s12, %s612_s13  }
  0x19   :  { %604 = dma.done.wait [#allocation3], 1024  }
  0x1a   :  { %605 = vsyncadd [#allocation3], 4294966272 }
  0x1b   :  { %606 = dma.done.wait [#allocation6], 1024  }
  0x1c   :  { %607 = vsyncadd [#allocation6], 4294966272  ;;  %v528_v0 = vld [vmem:[#allocation5 + $0x38] sm:$0xff]   ;;  %v529_v1 = vld [vmem:[#allocation5 + $0x30] sm:$0xff]   ;;  %s614_s0 = smov [#allocation7]  }
  0x1d   :  { %475 = vmatprep.subr.bf16.mxu0 %v528_v0  ;;  %507 = vmatprep.subr.bf16.mxu1 %v528_v0  ;;  %v530_v2 = vld [vmem:[#allocation5 + $0x28] sm:$0xff]   ;;  %v531_v3 = vld [vmem:[#allocation5 + $0x20] sm:$0xff]   ;;  %v532_v6 = vld [vmem:[#allocation5 + $0x18] sm:$0xff]   ;;  %s351_s1 = sshll.u32 %s614_s0, 4  ;;  %s352_s1 = int_to_ptr.vmem [resolvable:$true] %s351_s1 }
  0x1e   :  { %476 = vmatpush3.bf16.msra.mxu0 %v528_v0  ;;  %515 = vmatpush3.bf16.msra.mxu1 %v528_v0  ;;  %v536_v4 = vld [vmem:[#allocation2] sm:$0xff]   ;;  %v533_v7 = vld [vmem:[#allocation5 + $0x10] sm:$0xff]   ;;  %v534_v8 = vld [vmem:[#allocation5 + $0x8] sm:$0xff]   ;;  %s584_s21 = scalar_lea.vmem %s352_s1, 1024  ;;  %p589_p11 = scmp.lt.s32.totalorder %s352_s1, %s352_s1 }
  0x1f   :  { %477 = vmatprep.subr.bf16.mxu0 %v529_v1  ;;  %508 = vmatprep.subr.bf16.mxu1 %v529_v1  ;;  %v537_v5 = vld [vmem:[#allocation2 + $0x20] sm:$0xff]   ;;  %v538_v10 = vld [vmem:[#allocation2 + $0x8] sm:$0xff]   ;;  %v540_v12 = vld [vmem:[#allocation2 + $0x10] sm:$0xff]   ;;  %p585_p10 = scmp.ne.s32.totalorder %s352_s1, %s584_s21  ;;  %p590_p12 = scmp.lt.s32.totalorder %s584_s21, %s584_s21 }
  0x20   :  { %491 = vmatprep.mubr.bf16.mxu0 %v536_v4  ;;  %499 = vmatprep.mubr.bf16.mxu1 %v537_v5  ;;  %v535_v9 = vld [vmem:[#allocation5] sm:$0xff]   ;;  %v539_v11 = vld [vmem:[#allocation2 + $0x28] sm:$0xff]   ;;  %v541_v13 = vld [vmem:[#allocation2 + $0x30] sm:$0xff]  }
  0x21   :  { %v542_v14 = vld [vmem:[#allocation2 + $0x18] sm:$0xff]   ;;  %p591_p13 = por %p590_p12, %p589_p11 }
  0x22   :  { %478 = vmatpush3.bf16.msra.mxu0 %v529_v1  ;;  %516 = vmatpush3.bf16.msra.mxu1 %v529_v1  ;;  %v543_v15 = vld [vmem:[#allocation2 + $0x38] sm:$0xff]  }
  0x23   :  { %479 = vmatprep.subr.bf16.mxu0 %v530_v2  ;;  %509 = vmatprep.subr.bf16.mxu1 %v530_v2  ;;  %p592_p0 = pnand %p591_p13, %p585_p10 }
  0x26   :  { %480 = vmatpush3.bf16.msra.mxu0 %v530_v2  ;;  %517 = vmatpush3.bf16.msra.mxu1 %v530_v2 }
  0x27   :  { %481 = vmatprep.subr.bf16.mxu0 %v531_v3  ;;  %510 = vmatprep.subr.bf16.mxu1 %v531_v3 }
  0x2a   :  { %482 = vmatpush3.bf16.msra.mxu0 %v531_v3  ;;  %518 = vmatpush3.bf16.msra.mxu1 %v531_v3 }
  0x2b   :  { %483 = vmatprep.subr.bf16.mxu0 %v532_v6  ;;  %511 = vmatprep.subr.bf16.mxu1 %v532_v6 }
  0x2e   :  { %484 = vmatpush3.bf16.msra.mxu0 %v532_v6  ;;  %519 = vmatpush3.bf16.msra.mxu1 %v532_v6 }
  0x2f   :  { %485 = vmatprep.subr.bf16.mxu0 %v533_v7  ;;  %512 = vmatprep.subr.bf16.mxu1 %v533_v7 }
  0x32   :  { %486 = vmatpush3.bf16.msra.mxu0 %v533_v7  ;;  %520 = vmatpush3.bf16.msra.mxu1 %v533_v7 }
  0x33   :  { %487 = vmatprep.subr.bf16.mxu0 %v534_v8  ;;  %513 = vmatprep.subr.bf16.mxu1 %v534_v8 }
  0x36   :  { %488 = vmatpush3.bf16.msra.mxu0 %v534_v8  ;;  %521 = vmatpush3.bf16.msra.mxu1 %v534_v8 }
  0x37   :  { %489 = vmatprep.subr.bf16.mxu0 %v535_v9  ;;  %514 = vmatprep.subr.bf16.mxu1 %v535_v9 }
  0x3a   :  { %490 = vmatpush3.bf16.msra.mxu0 %v535_v9  ;;  %522 = vmatpush3.bf16.msra.mxu1 %v535_v9 }
  0x3d   :  { %492 = vmatmul.mubr.bf16.vlgmr.msra.gmra.mxu0 %v538_v10  ;;  %500 = vmatmul.mubr.bf16.vlgmr.msra.gmra.mxu1 %v539_v11 }
  0x3e   :  { %495 = vmatprep.mubr.bf16.mxu0 %v540_v12  ;;  %503 = vmatprep.mubr.bf16.mxu1 %v541_v13 }
  0x45   :  { %496 = vmatmul.mubr.bf16.gmra.mxu0 %v542_v14  ;;  %504 = vmatmul.mubr.bf16.gmra.mxu1 %v543_v15 }
  0xfd   :  { %v493_v16 = vpop.f32.mrf.mxu0  ;;  %v501_v17 = vpop.f32.mrf.mxu1 }
  0xff   :  { %v203_v18 = vpop.f32.mrf.mxu0  ;;  %v235_v19 = vpop.f32.mrf.mxu1 }
 0x101   :  { %v494_v20 = vpop.f32.mrf.mxu0  ;;  %v502_v21 = vpop.f32.mrf.mxu1 }
 0x102   :  { %v420_v22 = vpack.c.bf16 %v494_v20, %v493_v16  ;;  %v440_v23 = vpack.c.bf16 %v502_v21, %v501_v17 }
 0x103   :  { %v206_v24 = vpop.f32.mrf.mxu0  ;;  %v238_v25 = vpop.f32.mrf.mxu1 }
 0x104   :  { %452 = vst [vmem:[#allocation7 + $0x8] sm:$0xff] %v420_v22   ;;  %456 = vst [vmem:[#allocation7 + $0x28] sm:$0xff] %v440_v23   ;;  %v415_v26 = vpack.c.bf16 %v206_v24, %v203_v18  ;;  %v435_v27 = vpack.c.bf16 %v238_v25, %v235_v19 }
 0x105   :  { %v497_v28 = vpop.f32.mrf.mxu0  ;;  %v505_v29 = vpop.f32.mrf.mxu1 }
 0x106   :  { %416 = vst [vmem:[#allocation7] sm:$0xff] %v415_v26   ;;  %455 = vst [vmem:[#allocation7 + $0x20] sm:$0xff] %v435_v27  }
 0x107   :  { %v219_v30 = vpop.f32.mrf.mxu0  ;;  %v251_v31 = vpop.f32.mrf.mxu1 }
 0x109   :  { %v498_v32 = vpop.f32.mrf.mxu0  ;;  %v506_v33 = vpop.f32.mrf.mxu1 }
 0x10a   :  { %v430_v34 = vpack.c.bf16 %v498_v32, %v497_v28  ;;  %v450_v35 = vpack.c.bf16 %v506_v33, %v505_v29 }
 0x10b   :  { %v222_v36 = vpop.f32.mrf.mxu0  ;;  %v254_v37 = vpop.f32.mrf.mxu1 }
 0x10c   :  { %454 = vst [vmem:[#allocation7 + $0x18] sm:$0xff] %v430_v34   ;;  %458 = vst [vmem:[#allocation7 + $0x38] sm:$0xff] %v450_v35   ;;  %v425_v38 = vpack.c.bf16 %v222_v36, %v219_v30  ;;  %v445_v39 = vpack.c.bf16 %v254_v37, %v251_v31 }
 0x10e   :  { %453 = vst [vmem:[#allocation7 + $0x10] sm:$0xff] %v425_v38   ;;  %457 = vst [vmem:[#allocation7 + $0x30] sm:$0xff] %v445_v39  }
 0x10f   :  { %595 = shalt.err (!%p592_p0)
}
 0x110   :  { %357 = dma.vmem_to_hbm [thread:$0]  %s352_s1, 1024, %s650_s2, [#allocation4], %s611_s12, %s611_s12, %s612_s13  }
 0x111   :  { %608 = dma.done.wait [#allocation4], 1024  }
 0x112   :  { %609 = vsyncadd [#allocation4], 4294966272 }
 0x113   :  { %361 = vsyncpa [#allocation3], 1 }
 0x114   :  { %362 = vsyncpa [#allocation6], 1 }
 0x115   :  { %363 = vsyncpa [#allocation4], 1 }

</bundles_post_ra>
